<compile_context>
chip_gen: v7x
topology: tpu7x:2x2x1
jax: 0.10.0
libtpu: 0.0.40
codegen_flags: <defaults>
</compile_context>

<pallas_src>
import functools

import jax
import jax.numpy as jnp
from jax.experimental import pallas as pl
from jax.experimental.pallas import tpu as pltpu

LANE = 128          # lane width used to pad the hidden dim of the weight slab
HIDDEN = 32
BATCH_TILE = 2048   # rows per grid step (multiple of 16)


def _round_up(x, m):
    return ((x + m - 1) // m) * m


def _qnetwork_kernel(x_ref, w1_ref, w23_ref, b_ref, o_ref, *, action_size):
    """x_ref: (TB, S8) f32; w1_ref: (S8, 128) f32; w23_ref: (2, 128, 128) f32;
    b_ref: (3, 128) f32; o_ref: (TB, action_size) f32.
    Padded rows/columns of the weight/bias slabs are zero, so the padded hidden
    lanes stay exactly zero through the ReLUs."""
    x = x_ref[...]                                                     # (TB, S8) f32

    # Layer 1: Linear(state -> 32) + ReLU (f32 accumulation on the MXU).
    h = jnp.dot(x, w1_ref[...], preferred_element_type=jnp.float32)   # (TB, 128)
    h = jnp.maximum(h + b_ref[0:1, :], 0.0)

    # Layer 2: Linear(32 -> 32) + ReLU.
    h = jnp.dot(h, w23_ref[0], preferred_element_type=jnp.float32)
    h = jnp.maximum(h + b_ref[1:2, :], 0.0)

    # Output layer: Linear(32 -> action), no activation.  Compute full lane width,
    # then store only the logical action columns (masked vst, tiny HBM writeback).
    out = jnp.dot(h, w23_ref[1], preferred_element_type=jnp.float32) + b_ref[2:3, :]
    o_ref[...] = out[:, 0:action_size]


def init_params(key, state_size, action_size, hidden=HIDDEN):
    """Deterministic init mimicking PyTorch nn.Linear (uniform +/- 1/sqrt(fan_in)).
    Weights stored as (in, out); biases as (out,)."""
    def linear(k, fan_in, fan_out):
        kw, kb = jax.random.split(k)
        bound = 1.0 / jnp.sqrt(fan_in)
        w = jax.random.uniform(kw, (fan_in, fan_out), jnp.float32, -bound, bound)
        b = jax.random.uniform(kb, (fan_out,), jnp.float32, -bound, bound)
        return w, b

    k1, k2, k3 = jax.random.split(key, 3)
    w1, b1 = linear(k1, state_size, hidden)
    w2, b2 = linear(k2, hidden, hidden)
    w3, b3 = linear(k3, hidden, action_size)
    return {"w1": w1, "b1": b1, "w2": w2, "b2": b2, "w3": w3, "b3": b3}


def pack_params(params):
    """Pack parameters into small padded f32 slabs:
       w1:  (S8, 128)    -- state dim padded only to a multiple of 8
       w23: (2, 128, 128)
       b:   (3, 128)
    All padding entries are zero."""
    w1, w2, w3 = params["w1"], params["w2"], params["w3"]
    b1, b2, b3 = params["b1"], params["b2"], params["b3"]
    state_size, action_size = w1.shape[0], w3.shape[1]
    hidden = w2.shape[0]
    assert hidden <= LANE and action_size <= LANE

    s8 = _round_up(state_size, 8)
    w1_p = jnp.zeros((s8, LANE), jnp.float32).at[:state_size, :hidden].set(w1)
    w2_p = jnp.zeros((LANE, LANE), jnp.float32).at[:hidden, :hidden].set(w2)
    w3_p = jnp.zeros((LANE, LANE), jnp.float32).at[:hidden, :action_size].set(w3)
    b_p = (jnp.zeros((3, LANE), jnp.float32)
           .at[0, :hidden].set(b1)
           .at[1, :hidden].set(b2)
           .at[2, :action_size].set(b3))
    return {
        "w1": w1_p,
        "w23": jnp.stack([w2_p, w3_p]),
        "b": b_p,
        "state_size": state_size,
        "action_size": action_size,
        "padded_state": s8,
    }


def qnetwork_forward(x, packed, *, batch_tile=BATCH_TILE):
    """x: (B, state_size) float32; packed: output of pack_params.
    Returns (B, action_size) float32."""
    w1, w23, b = packed["w1"], packed["w23"], packed["b"]
    state_size = packed["state_size"]
    action_size = packed["action_size"]
    s8 = packed["padded_state"]

    B = x.shape[0]
    b16 = _round_up(max(B, 1), 16)
    if b16 <= 1024:
        tb = b16                                   # single grid step for small batches
    else:
        # >= 2 balanced steps so the "parallel" axis can shard across v7x's 2 TCs.
        tb = min(batch_tile, _round_up((b16 + 1) // 2, 16))
    nb = pl.cdiv(b16, tb)
    b_pad = nb * tb

    x_p = x.astype(jnp.float32)
    if b_pad != B or s8 != state_size:
        x_p = jnp.pad(x_p, ((0, b_pad - B), (0, s8 - state_size)))

    # Logical (unpadded) cost for the XLA scheduler.
    flops = 2 * B * (state_size * HIDDEN + HIDDEN * HIDDEN + HIDDEN * action_size)
    bytes_accessed = int(
        B * state_size * 4                                            # x
        + (state_size * HIDDEN + HIDDEN * HIDDEN + HIDDEN * action_size) * 4  # W
        + (2 * HIDDEN + action_size) * 4                              # b
        + B * action_size * 4                                         # out
    )
    cost = pl.CostEstimate(flops=flops, transcendentals=0,
                           bytes_accessed=bytes_accessed)

    kernel = functools.partial(_qnetwork_kernel, action_size=action_size)

    out = pl.pallas_call(
        kernel,
        out_shape=jax.ShapeDtypeStruct((b_pad, action_size), jnp.float32),
        grid=(nb,),
        in_specs=[
            pl.BlockSpec((tb, s8), lambda i: (i, 0)),            # x: tiled over batch
            pl.BlockSpec((s8, LANE), lambda i: (0, 0)),          # w1: resident
            pl.BlockSpec((2, LANE, LANE), lambda i: (0, 0, 0)),  # w2/w3: resident
            pl.BlockSpec((3, LANE), lambda i: (0, 0)),           # biases: resident
        ],
        out_specs=pl.BlockSpec((tb, action_size), lambda i: (i, 0)),
        compiler_params=pltpu.CompilerParams(
            dimension_semantics=("parallel",),   # shard batch steps across TCs (v7x)
        ),
        cost_estimate=cost,
    )(x_p, w1, w23, b)

    return out[:B] if b_pad != B else out


def qnetwork_reference(x, params):
    """Pure-JAX f32 reference of the PyTorch forward."""
    h = jax.nn.relu(x @ params["w1"] + params["b1"])
    h = jax.nn.relu(h @ params["w2"] + params["b2"])
    return h @ params["w3"] + params["b3"]


if __name__ == "__main__":
    key = jax.random.PRNGKey(0)
    k_param, k_x = jax.random.split(key)

    batch = 8
    state_size = 8
    action_size = 4

    params = init_params(k_param, state_size, action_size)
    packed = pack_params(params)
    x = jax.random.normal(k_x, (batch, state_size), jnp.float32)

    out = qnetwork_forward(x, packed)
    out = jax.block_until_ready(out)

    ref = qnetwork_reference(x, params)
    assert out.shape == (batch, action_size)
    assert jnp.allclose(out, ref, atol=3e-2, rtol=3e-2), float(jnp.max(jnp.abs(out - ref)))

    print("KERNEL_OK")
</pallas_src>

<mosaic_0001>
module attributes {stable_mosaic.version = 11 : i64} {
  func.func @_qnetwork_kernel(%arg0: i32, %arg1: memref<16x8xf32, #tpu.memory_space<vmem>>, %arg2: memref<8x128xf32, #tpu.memory_space<vmem>>, %arg3: memref<2x128x128xf32, #tpu.memory_space<vmem>>, %arg4: memref<3x128xf32, #tpu.memory_space<vmem>>, %arg5: memref<16x4xf32, #tpu.memory_space<vmem>>) attributes {dimension_semantics = [#tpu.dimension_semantics<parallel>], iteration_bounds = array<i64: 1>, scalar_prefetch = 0 : i64, scratch_operands = 0 : i64, tpu.core_type = #tpu.core_type<tc>, window_params = [{transform_indices = @transform_0, window_bounds = array<i64: 16, 8>}, {pipeline_mode = #tpu.pipeline_mode<synchronous>, transform_indices = @transform_1, window_bounds = array<i64: 8, 128>}, {pipeline_mode = #tpu.pipeline_mode<synchronous>, transform_indices = @transform_2, window_bounds = array<i64: 2, 128, 128>}, {pipeline_mode = #tpu.pipeline_mode<synchronous>, transform_indices = @transform_3, window_bounds = array<i64: 3, 128>}, {transform_indices = @transform_4, window_bounds = array<i64: 16, 4>}]} {
    %c0 = arith.constant 0 : index
    %c0_0 = arith.constant 0 : index
    %0 = vector.load %arg1[%c0, %c0_0] : memref<16x8xf32, #tpu.memory_space<vmem>>, vector<16x8xf32>
    %c0_1 = arith.constant 0 : index
    %c0_2 = arith.constant 0 : index
    %1 = vector.load %arg2[%c0_1, %c0_2] : memref<8x128xf32, #tpu.memory_space<vmem>>, vector<8x128xf32>
    %cst = arith.constant dense<0.000000e+00> : vector<16x128xf32>
    %2 = tpu.matmul %0, %1, %cst {dimension_numbers = #tpu.dot_dimension_numbers<[1], [0], [0], [1], [0, 0, 1, 1], [], []>} : vector<16x8xf32>, vector<8x128xf32>, vector<16x128xf32> -> vector<16x128xf32>
    %c0_3 = arith.constant 0 : index
    %c0_4 = arith.constant 0 : index
    %3 = vector.load %arg4[%c0_3, %c0_4] : memref<3x128xf32, #tpu.memory_space<vmem>>, vector<1x128xf32>
    %4 = vector.broadcast %3 : vector<1x128xf32> to vector<16x128xf32>
    %5 = arith.addf %2, %4 : vector<16x128xf32>
    %cst_5 = arith.constant 0.000000e+00 : f32
    %6 = vector.broadcast %cst_5 : f32 to vector<16x128xf32>
    %7 = arith.maximumf %5, %6 : vector<16x128xf32>
    %c0_6 = arith.constant 0 : index
    %c0_7 = arith.constant 0 : index
    %c0_8 = arith.constant 0 : index
    %8 = vector.load %arg3[%c0_6, %c0_7, %c0_8] : memref<2x128x128xf32, #tpu.memory_space<vmem>>, vector<1x128x128xf32>
    %9 = vector.shape_cast %8 : vector<1x128x128xf32> to vector<128x128xf32>
    %cst_9 = arith.constant dense<0.000000e+00> : vector<16x128xf32>
    %10 = tpu.matmul %7, %9, %cst_9 {dimension_numbers = #tpu.dot_dimension_numbers<[1], [0], [0], [1], [0, 0, 1, 1], [], []>} : vector<16x128xf32>, vector<128x128xf32>, vector<16x128xf32> -> vector<16x128xf32>
    %c1 = arith.constant 1 : index
    %c0_10 = arith.constant 0 : index
    %11 = vector.load %arg4[%c1, %c0_10] : memref<3x128xf32, #tpu.memory_space<vmem>>, vector<1x128xf32>
    %12 = vector.broadcast %11 : vector<1x128xf32> to vector<16x128xf32>
    %13 = arith.addf %10, %12 : vector<16x128xf32>
    %cst_11 = arith.constant 0.000000e+00 : f32
    %14 = vector.broadcast %cst_11 : f32 to vector<16x128xf32>
    %15 = arith.maximumf %13, %14 : vector<16x128xf32>
    %c1_12 = arith.constant 1 : index
    %c0_13 = arith.constant 0 : index
    %c0_14 = arith.constant 0 : index
    %16 = vector.load %arg3[%c1_12, %c0_13, %c0_14] : memref<2x128x128xf32, #tpu.memory_space<vmem>>, vector<1x128x128xf32>
    %17 = vector.shape_cast %16 : vector<1x128x128xf32> to vector<128x128xf32>
    %cst_15 = arith.constant dense<0.000000e+00> : vector<16x128xf32>
    %18 = tpu.matmul %15, %17, %cst_15 {dimension_numbers = #tpu.dot_dimension_numbers<[1], [0], [0], [1], [0, 0, 1, 1], [], []>} : vector<16x128xf32>, vector<128x128xf32>, vector<16x128xf32> -> vector<16x128xf32>
    %c2 = arith.constant 2 : index
    %c0_16 = arith.constant 0 : index
    %19 = vector.load %arg4[%c2, %c0_16] : memref<3x128xf32, #tpu.memory_space<vmem>>, vector<1x128xf32>
    %20 = vector.broadcast %19 : vector<1x128xf32> to vector<16x128xf32>
    %21 = arith.addf %18, %20 : vector<16x128xf32>
    %22 = vector.extract_strided_slice %21 {offsets = [0, 0], sizes = [16, 4], strides = [1, 1]} : vector<16x128xf32> to vector<16x4xf32>
    %c0_17 = arith.constant 0 : index
    %c0_18 = arith.constant 0 : index
    %23 = vector.load %arg5[%c0_17, %c0_18] : memref<16x4xf32, #tpu.memory_space<vmem>>, vector<16x4xf32>
    tpu.vector_store %arg5[%c0_17, %c0_18], %22 {strides = array<i32>} : memref<16x4xf32, #tpu.memory_space<vmem>>, vector<16x4xf32>,
    return
  }
  func.func @transform_0(%arg0: i32) -> (i32, i32) {
    %c0_i32 = arith.constant 0 : i32
    %c0_i32_0 = arith.constant 0 : i32
    return %arg0, %c0_i32 : i32, i32
  }
  func.func @transform_1(%arg0: i32) -> (i32, i32) {
    %c0_i32 = arith.constant 0 : i32
    %c0_i32_0 = arith.constant 0 : i32
    %c0_i32_1 = arith.constant 0 : i32
    return %c0_i32, %c0_i32_0 : i32, i32
  }
  func.func @transform_2(%arg0: i32) -> (i32, i32, i32) {
    %c0_i32 = arith.constant 0 : i32
    %c0_i32_0 = arith.constant 0 : i32
    %c0_i32_1 = arith.constant 0 : i32
    %c0_i32_2 = arith.constant 0 : i32
    return %c0_i32, %c0_i32_0, %c0_i32_1 : i32, i32, i32
  }
  func.func @transform_3(%arg0: i32) -> (i32, i32) {
    %c0_i32 = arith.constant 0 : i32
    %c0_i32_0 = arith.constant 0 : i32
    %c0_i32_1 = arith.constant 0 : i32
    return %c0_i32, %c0_i32_0 : i32, i32
  }
  func.func @transform_4(%arg0: i32) -> (i32, i32) {
    %c0_i32 = arith.constant 0 : i32
    %c0_i32_0 = arith.constant 0 : i32
    return %arg0, %c0_i32 : i32, i32
  }
}

</mosaic_0001>

<bundles_post_ra>
// kernel: tpu_custom_call.1
= control target key start
LH: loop header
LB: loop body
LE: loop exit
PB: predicated region body
PF: predicated region fallthrough
CT: control target
= control target key end

     0   :  { %9 = vsyncpa [#allocation3], 0  ;;  %s536_s15 = smov [#allocation2]   ;;  %s600_s0 = inlined_call_operand.vmem [shape: f32[16,8], index: 0, kind: input, shape index: {}]   ;;  %s601_s1 = inlined_call_operand.vmem [shape: f32[8,128], index: 1, kind: input, shape index: {}]   ;;  %s602_s2 = inlined_call_operand.hbm [shape: f32[2,128,128], index: 2, kind: input, shape index: {}]   ;;  %s603_s3 = inlined_call_operand.vmem [shape: f32[3,128], index: 3, kind: input, shape index: {}]   ;;  %s604_s4 = inlined_call_operand.vmem [shape: f32[16,4], index: 4, kind: output, shape index: {}]  }
   0x1   :  { %s19_s16 = sshll.u32 %s536_s15, 4  ;;  %s512_s19 = scalar_lea.hbm %s602_s2, 4096  ;;  %s20_s16 = int_to_ptr.vmem [resolvable:$true] %s19_s16 }
   0x2   :  { %p513_p0 = scmp.ne.s32.totalorder %s602_s2, %s512_s19  ;;  %p516_p1 = scmp.lt.u32.totalorder %s512_s19, %s602_s2 }
   0x4   :  { %p518_p2 = pnand %p516_p1, %p513_p0 }
   0x6   :  { %521 = shalt.err (!%p518_p2)
}
   0x7   :  { %s522_s24 = scalar_lea.vmem %s20_s16, 4096  ;;  %p527_p4 = scmp.lt.s32.totalorder %s20_s16, %s20_s16 }
   0x8   :  { %p523_p3 = scmp.ne.s32.totalorder %s20_s16, %s522_s24  ;;  %p528_p5 = scmp.lt.s32.totalorder %s522_s24, %s522_s24 }
   0xa   :  { %p529_p6 = por %p528_p5, %p527_p4 }
   0xc   :  { %p530_p7 = pnand %p529_p6, %p523_p3 }
   0xe   :  { %533 = shalt.err (!%p530_p7)
}
   0xf   :  { %s537_s25 = smov 128   ;;  %s538_s26 = smov 8  }
  0x10   :  { %25 = dma.hbm_to_vmem [thread:$0]  %s602_s2, 4096, %s20_s16, [#allocation3], %s537_s25, %s537_s25, %s538_s26  }
  0x11   :  { %534 = dma.done.wait [#allocation3], 4096  }
  0x12   :  { %535 = vsyncadd [#allocation3], 4294963200  ;;  %vm39_vm0 = vcmask 64512   ;;  %v33_v0 = vld [vmem:[%s601_s1] sm:$0xff]  ;;  %v32_v2 = vld [vmem:[%s600_s0 + $0x8] sm:$0xff]  ;;  %vm318_vm1 = vcmask 31744  }
  0x13   :  { %v31_v1 = vld [vmem:[%s600_s0] sm:$0xff]  ;;  %370 = vmatprep.subr.mxu0 %v33_v0  ;;  %v124_v4 = vld [vmem:[#allocation2 + $0x8] sm:$0xff]  ;;  %v125_v5 = vld [vmem:[#allocation2 + $0x10] sm:$0xff] }
  0x14   :  { %372 = vmatprep.mubr.msk.f32.mxu0 %vm39_vm0, %v31_v1  ;;  %v123_v3 = vld [vmem:[#allocation2] sm:$0xff]  ;;  %371 = vmatpush3.msra.mxu0 %v33_v0  ;;  %v126_v7 = vld [vmem:[#allocation2 + $0x18] sm:$0xff]  ;;  %v128_v10 = vld [vmem:[#allocation2 + $0x28] sm:$0xff] }
  0x15   :  { %v445_v6 = vpack.c.bf16 %v124_v4, %v123_v3  ;;  %373 = vmatmul.mubr.msk.f32.vlgmr.msra.gmra.mrb[0].mxu0 %vm39_vm0, %v32_v2  ;;  %v449_v8 = vpack.c.bf16 %v126_v7, %v125_v5  ;;  %v127_v9 = vld [vmem:[#allocation2 + $0x20] sm:$0xff]  ;;  %v129_v12 = vld [vmem:[#allocation2 + $0x30] sm:$0xff]  ;;  %v130_v13 = vld [vmem:[#allocation2 + $0x38] sm:$0xff] }
  0x16   :  { %v453_v11 = vpack.c.bf16 %v128_v10, %v127_v9  ;;  %v457_v14 = vpack.c.bf16 %v130_v13, %v129_v12  ;;  %v131_v15 = vld [vmem:[#allocation2 + $0x40] sm:$0xff]  ;;  %v132_v16 = vld [vmem:[#allocation2 + $0x48] sm:$0xff]  ;;  %v133_v18 = vld [vmem:[#allocation2 + $0x50] sm:$0xff] }
  0x17   :  { %446 = vmatprep.subr.bf16.mxu1 %v445_v6  ;;  %v461_v17 = vpack.c.bf16 %v132_v16, %v131_v15  ;;  %v134_v19 = vld [vmem:[#allocation2 + $0x58] sm:$0xff]  ;;  %v135_v21 = vld [vmem:[#allocation2 + $0x60] sm:$0xff]  ;;  %v136_v22 = vld [vmem:[#allocation2 + $0x68] sm:$0xff] }
  0x18   :  { %448 = vmatpush3.bf16.msra.mxu1 %v445_v6  ;;  %v465_v20 = vpack.c.bf16 %v134_v19, %v133_v18  ;;  %v469_v23 = vpack.c.bf16 %v136_v22, %v135_v21  ;;  %v137_v24 = vld [vmem:[#allocation2 + $0x70] sm:$0xff]  ;;  %v138_v25 = vld [vmem:[#allocation2 + $0x78] sm:$0xff]  ;;  %v222_v27 = vld [vmem:[#allocation2 + $0x80] sm:$0xff] }
  0x19   :  { %450 = vmatprep.subr.bf16.mxu1 %v449_v8  ;;  %v473_v26 = vpack.c.bf16 %v138_v25, %v137_v24  ;;  %v223_v28 = vld [vmem:[#allocation2 + $0x88] sm:$0xff]  ;;  %v224_v29 = vld [vmem:[#allocation2 + $0x90] sm:$0xff]  ;;  %v225_v31 = vld [vmem:[#allocation2 + $0x98] sm:$0xff] }
  0x1a   :  { %v477_v30 = vpack.c.bf16 %v223_v28, %v222_v27  ;;  %v481_v32 = vpack.c.bf16 %v225_v31, %v224_v29  ;;  %v226_v33 = vld [vmem:[#allocation2 + $0xa0] sm:$0xff]  ;;  %v227_v34 = vld [vmem:[#allocation2 + $0xa8] sm:$0xff]  ;;  %v228_v36 = vld [vmem:[#allocation2 + $0xb0] sm:$0xff] }
  0x1b   :  { %v485_v35 = vpack.c.bf16 %v227_v34, %v226_v33  ;;  %v229_v37 = vld [vmem:[#allocation2 + $0xb8] sm:$0xff]  ;;  %v230_v39 = vld [vmem:[#allocation2 + $0xc0] sm:$0xff]  ;;  %v231_v40 = vld [vmem:[#allocation2 + $0xc8] sm:$0xff] }
  0x1c   :  { %452 = vmatpush3.bf16.msra.mxu1 %v449_v8  ;;  %478 = vmatprep.subr.bf16.mxu0 %v477_v30  ;;  %v489_v38 = vpack.c.bf16 %v229_v37, %v228_v36  ;;  %v493_v41 = vpack.c.bf16 %v231_v40, %v230_v39  ;;  %v232_v42 = vld [vmem:[#allocation2 + $0xd0] sm:$0xff]  ;;  %v233_v43 = vld [vmem:[#allocation2 + $0xd8] sm:$0xff]  ;;  %v234_v45 = vld [vmem:[#allocation2 + $0xe0] sm:$0xff] }
  0x1d   :  { %454 = vmatprep.subr.bf16.mxu1 %v453_v11  ;;  %480 = vmatpush3.bf16.msra.mxu0 %v477_v30  ;;  %v497_v44 = vpack.c.bf16 %v233_v43, %v232_v42  ;;  %v235_v46 = vld [vmem:[#allocation2 + $0xe8] sm:$0xff]  ;;  %v326_v48 = vld [vmem:[%s603_s3] ss:$0 sm:$0xff]  ;;  %v236_v55 = vld [vmem:[#allocation2 + $0xf0] sm:$0xff] }
  0x1e   :  { %482 = vmatprep.subr.bf16.mxu0 %v481_v32  ;;  %v501_v47 = vpack.c.bf16 %v235_v46, %v234_v45  ;;  %v237_v56 = vld [vmem:[#allocation2 + $0xf8] sm:$0xff]  ;;  %v329_v58 = vld [vmem:[%s603_s3 + $0x1] ss:$0 sm:$0xff]  ;;  %v330_v1 = vld [vmem:[%s603_s3 + $0x2] ss:$0 sm:$0xff] }
  0x1f   :  { %v505_v57 = vpack.c.bf16 %v237_v56, %v236_v55 }
  0x20   :  { %456 = vmatpush3.bf16.msra.mxu1 %v453_v11 }
  0x21   :  { %458 = vmatprep.subr.bf16.mxu1 %v457_v14  ;;  %484 = vmatpush3.bf16.msra.mxu0 %v481_v32 }
  0x22   :  { %486 = vmatprep.subr.bf16.mxu0 %v485_v35 }
  0x24   :  { %460 = vmatpush3.bf16.msra.mxu1 %v457_v14 }
  0x25   :  { %462 = vmatprep.subr.bf16.mxu1 %v461_v17  ;;  %488 = vmatpush3.bf16.msra.mxu0 %v485_v35 }
  0x26   :  { %490 = vmatprep.subr.bf16.mxu0 %v489_v38 }
  0x28   :  { %464 = vmatpush3.bf16.msra.mxu1 %v461_v17 }
  0x29   :  { %466 = vmatprep.subr.bf16.mxu1 %v465_v20  ;;  %492 = vmatpush3.bf16.msra.mxu0 %v489_v38 }
  0x2a   :  { %494 = vmatprep.subr.bf16.mxu0 %v493_v41 }
  0x2c   :  { %468 = vmatpush3.bf16.msra.mxu1 %v465_v20 }
  0x2d   :  { %470 = vmatprep.subr.bf16.mxu1 %v469_v23  ;;  %496 = vmatpush3.bf16.msra.mxu0 %v493_v41 }
  0x2e   :  { %498 = vmatprep.subr.bf16.mxu0 %v497_v44 }
  0x30   :  { %472 = vmatpush3.bf16.msra.mxu1 %v469_v23 }
  0x31   :  { %474 = vmatprep.subr.bf16.mxu1 %v473_v26  ;;  %500 = vmatpush3.bf16.msra.mxu0 %v497_v44 }
  0x32   :  { %502 = vmatprep.subr.bf16.mxu0 %v501_v47 }
  0x34   :  { %476 = vmatpush3.bf16.msra.mxu1 %v473_v26 }
  0x35   :  { %504 = vmatpush3.bf16.msra.mxu0 %v501_v47 }
  0x36   :  { %506 = vmatprep.subr.bf16.mxu0 %v505_v57 }
  0x39   :  { %508 = vmatpush3.bf16.msra.mxu0 %v505_v57 }
  0xe8   :  { %v374_v49 = vpop.f32.mrb[0].mxu0 }
  0xe9   :  { %v118_v50 = vadd.f32 %v374_v49, %v326_v48  ;;  %v112_v51 = vpop.f32.mrb[1].mxu0 }
  0xea   :  { %v113_v52 = vadd.f32 %v326_v48, %v112_v51 }
  0xeb   :  { %v122_v54 = vmax.f32 %v118_v50, 0.0 }
  0xec   :  { %v121_v53 = vmax.f32 %v113_v52, 0.0 }
  0xee   :  { %407 = vmatprep.mubr.f32.mxu1 %v121_v53 }
  0xef   :  { %408 = vmatmul.mubr.f32.vlgmr.msra.gmra.mrb[0].mxu1 %v122_v54 }
 0x1c2   :  { %v409_v59 = vpop.f32.mrb[0].mxu1 }
 0x1c3   :  { %v216_v60 = vadd.f32 %v409_v59, %v329_v58  ;;  %v210_v61 = vpop.f32.mrb[1].mxu1 }
 0x1c4   :  { %v211_v62 = vadd.f32 %v329_v58, %v210_v61 }
 0x1c5   :  { %v220_v0 = vmax.f32 %v216_v60, 0.0 }
 0x1c6   :  { %v219_v63 = vmax.f32 %v211_v62, 0.0 }
 0x1c8   :  { %442 = vmatprep.mubr.f32.mxu0 %v219_v63 }
 0x1c9   :  { %443 = vmatmul.mubr.f32.vlgmr.msra.gmra.mrb[2].mxu0 %v220_v0 }
 0x29c   :  { %v444_v2 = vpop.f32.mrb[2].mxu0 }
 0x29d   :  { %v315_v3 = vadd.f32 %v444_v2, %v330_v1  ;;  %v309_v4 = vpop.f32.mrb[3].mxu0 }
 0x29e   :  { %v310_v5 = vadd.f32 %v330_v1, %v309_v4 }
 0x29f   :  { %320 = vst.msk [vmem:[%s604_s4 + $0x8] sm:$0xff] %vm318_vm1, %v315_v3 }
 0x2a0   :  { %319 = vst.msk [vmem:[%s604_s4] sm:$0xff] %vm318_vm1, %v310_v5 }
 0x2a1   :  { %325 = vsyncpa [#allocation3], 1 }

</bundles_post_ra>
